<compile_context>
chip_gen: v5e
topology: v5e:2x2
jax: 0.10.0
libtpu: 0.0.40
codegen_flags: <defaults>
</compile_context>

<pallas_src>
import functools

import jax
import jax.numpy as jnp
from jax.experimental import pallas as pl
from jax.experimental.pallas import tpu as pltpu


def _round_up(n, m):
    return ((n + m - 1) // m) * m


def _mlp_kernel(x_ref, w1_ref, b1_ref, w2_ref, b2_ref, w3_ref, b3_ref, o_ref):
    # In-kernel cast of the activation tile to the matmul dtype (free VALU
    # work); x arrives from HBM as f32 so the host never re-writes it.
    x = x_ref[...].astype(w1_ref.dtype)

    # Layer 1: Linear -> ReLU.  (BN1 affine already folded into w2/b2.)
    h1 = jnp.dot(x, w1_ref[...], preferred_element_type=jnp.float32)
    h1 = jnp.maximum(h1 + b1_ref[...], 0.0)

    # Layer 2: Linear -> ReLU.  (BN2 affine already folded into w3/b3.)
    h2 = jnp.dot(h1.astype(w2_ref.dtype), w2_ref[...],
                 preferred_element_type=jnp.float32)
    h2 = jnp.maximum(h2 + b2_ref[...], 0.0)

    # Layer 3: Linear (unpadded logits, last dim = out_dim).
    out = jnp.dot(h2.astype(w3_ref.dtype), w3_ref[...],
                  preferred_element_type=jnp.float32)
    o_ref[...] = (out + b3_ref[...]).astype(o_ref.dtype)


def _pad2(a, rows, cols):
    r, c = a.shape
    return jnp.pad(a, ((0, rows - r), (0, cols - c)))


@functools.partial(jax.jit, static_argnames=("block_m", "use_bf16"))
def mlp_forward(x, params, block_m=512, use_bf16=True):
    """Fused forward pass of NN (inference mode).

    x: (batch, emb_dim) float32
    params: dict of weights / biases / BN (scale, shift) as produced by
            init_params (BN folding + lane padding happen here, on the host).
    """
    batch, emb_dim = x.shape
    w1, b1, s1, t1 = params["w1"], params["b1"], params["s1"], params["t1"]
    w2, b2, s2, t2 = params["w2"], params["b2"], params["s2"], params["t2"]
    w3, b3 = params["w3"], params["b3"]
    n_hid1 = w1.shape[1]
    n_hid2q = w2.shape[1]
    out_dim = w3.shape[1]

    # ---- host-side prep: fold BN affines into the next layer --------------
    #   (h*s1 + t1) @ w2 + b2 == h @ (s1.T * w2) + (b2 + t1 @ w2)
    w2f = s1.T * w2
    b2f = b2 + t1 @ w2
    w3f = s2.T * w3
    b3f = b3 + t2 @ w3

    # ---- host-side prep: zero-pad hidden minor dims to 128 lanes ----------
    # (output stays unpadded: out_dim last dim, full-array-dim block)
    h1p = _round_up(n_hid1, 128)
    h2p = _round_up(n_hid2q, 128)
    w1p = _pad2(w1, emb_dim, h1p)
    b1p = _pad2(b1, 1, h1p)
    w2p = _pad2(w2f, h1p, h2p)
    b2p = _pad2(b2f, 1, h2p)
    w3p = _pad2(w3f, h2p, out_dim)   # zero rows: padded h2 lanes contribute 0
    b3p = b3f

    # ---- batch tiling: multiples of 128, and >=2 grid steps when possible -
    # (keeps MXU passes full-height, layouts unmasked, and both v7x TCs busy)
    bm_req = max(128, _round_up(block_m, 128))
    bm_cap = max(128, _round_up(pl.cdiv(batch, 2), 128))
    bm = min(bm_req, bm_cap)
    grid = (pl.cdiv(batch, bm),)
    batch_p = grid[0] * bm
    x_p = x if batch_p == batch else jnp.pad(x, ((0, batch_p - batch), (0, 0)))

    # ---- bf16 MXU operands (weights only; x is cast inside the kernel) ----
    # bf16 is the fast path on v5e/v6e/v7x alike (all MXUs are bf16-native);
    # accumulation and post-matmul elementwise math stay f32.
    cdt = jnp.bfloat16 if use_bf16 else jnp.float32
    w1p, w2p, w3p = (w.astype(cdt) for w in (w1p, w2p, w3p))

    # Resident (constant-index) operands; Mosaic skips re-DMAing blocks whose
    # index doesn't change across grid steps.  pipeline_mode=pl.Buffered(1)
    # would also drop the second buffer, but at <0.2 MiB it isn't worth the
    # extra lowering surface.
    full = lambda shape: pl.BlockSpec(shape, lambda i: (0, 0))

    out = pl.pallas_call(
        _mlp_kernel,
        out_shape=jax.ShapeDtypeStruct((batch_p, out_dim), jnp.float32),
        grid_spec=pltpu.PrefetchScalarGridSpec(
            num_scalar_prefetch=0,
            grid=grid,
            in_specs=[
                pl.BlockSpec((bm, emb_dim), lambda i: (i, 0)),
                full((emb_dim, h1p)),
                full((1, h1p)),
                full((h1p, h2p)),
                full((1, h2p)),
                full((h2p, out_dim)),
                full((1, out_dim)),
            ],
            out_specs=pl.BlockSpec((bm, out_dim), lambda i: (i, 0)),
        ),
        compiler_params=pltpu.CompilerParams(
            dimension_semantics=("parallel",)),
    )(x_p, w1p, b1p, w2p, b2p, w3p, b3p)

    return out if batch_p == batch else out[:batch]


def init_params(key, emb_dim, out_dim, n_hid1=256, n_hid2=256, eps=1e-5):
    """Deterministic parameter init mirroring the PyTorch __init__.

    Linear weights: kaiming_normal_ (std = sqrt(2/fan_in)), biases zero.
    BatchNorm1d: gamma=1, beta=0, running_mean=0, running_var=1, expressed as
    eval-mode (scale, shift) pairs.
    """
    h2q = n_hid2 // 4
    k1, k2, k3 = jax.random.split(key, 3)

    def kaiming(k, fan_in, fan_out):
        std = (2.0 / fan_in) ** 0.5
        return std * jax.random.normal(k, (fan_in, fan_out), dtype=jnp.float32)

    def bn_fold(n):
        gamma = jnp.ones((1, n), jnp.float32)
        beta = jnp.zeros((1, n), jnp.float32)
        running_mean = jnp.zeros((1, n), jnp.float32)
        running_var = jnp.ones((1, n), jnp.float32)
        scale = gamma / jnp.sqrt(running_var + eps)
        shift = beta - running_mean * scale
        return scale, shift

    s1, t1 = bn_fold(n_hid1)
    s2, t2 = bn_fold(h2q)
    return {
        "w1": kaiming(k1, emb_dim, n_hid1),
        "b1": jnp.zeros((1, n_hid1), jnp.float32),
        "s1": s1, "t1": t1,
        "w2": kaiming(k2, n_hid1, h2q),
        "b2": jnp.zeros((1, h2q), jnp.float32),
        "s2": s2, "t2": t2,
        "w3": kaiming(k3, h2q, out_dim),
        "b3": jnp.zeros((1, out_dim), jnp.float32),
    }


def _reference(x, p):
    # Pure-JAX f32 reference of the same (inference-mode) forward,
    # with BN applied explicitly (unfolded).
    h1 = jnp.maximum(x @ p["w1"] + p["b1"], 0.0) * p["s1"] + p["t1"]
    h2 = jnp.maximum(h1 @ p["w2"] + p["b2"], 0.0) * p["s2"] + p["t2"]
    return h2 @ p["w3"] + p["b3"]


if __name__ == "__main__":
    # TODO(synk): training-mode Dropout / batch-statistics BatchNorm not
    # implemented; kernel reproduces eval()-mode forward semantics.
    emb_dim, out_dim = 32, 16
    batch = 200  # non-multiple of 128 -> exercises cdiv + batch padding,
                 # and yields a 2-step grid (both v7x TensorCores active)

    key = jax.random.PRNGKey(0)
    kx, kp, kb = jax.random.split(key, 3)
    x = jax.random.normal(kx, (batch, emb_dim), dtype=jnp.float32)
    params = init_params(kp, emb_dim, out_dim)

    # Give BatchNorm non-trivial running statistics (as after training) so the
    # host-side fold into w2/b2 and w3/b3 is actually exercised.
    ka, kb2, kc, kd = jax.random.split(kb, 4)
    params["s1"] = jax.random.uniform(ka, params["s1"].shape, minval=0.5, maxval=1.5)
    params["t1"] = jax.random.uniform(kb2, params["t1"].shape, minval=-0.5, maxval=0.5)
    params["s2"] = jax.random.uniform(kc, params["s2"].shape, minval=0.5, maxval=1.5)
    params["t2"] = jax.random.uniform(kd, params["t2"].shape, minval=-0.5, maxval=0.5)

    ref = _reference(x, params)

    # f32 operands: tight check of folding / padding / tiling logic.
    out_f32 = mlp_forward(x, params, block_m=128, use_bf16=False)
    out_f32 = jax.block_until_ready(out_f32)
    assert out_f32.shape == (batch, out_dim)
    assert jnp.allclose(out_f32, ref, atol=2e-3, rtol=2e-3), "f32 mismatch vs reference"

    # bf16 MXU operands (fast path on every generation): looser tolerance.
    out_bf16 = mlp_forward(x, params, use_bf16=True)
    out_bf16 = jax.block_until_ready(out_bf16)
    assert out_bf16.shape == (batch, out_dim)
    assert jnp.allclose(out_bf16, ref, atol=1e-1, rtol=5e-2), "bf16 mismatch vs reference"

    print("KERNEL_OK")
</pallas_src>

<mosaic_0001>
module attributes {stable_mosaic.version = 11 : i64} {
  func.func @_mlp_kernel(%arg0: i32, %arg1: memref<128x32xf32, #tpu.memory_space<vmem>>, %arg2: memref<32x256xf32, #tpu.memory_space<vmem>>, %arg3: memref<1x256xf32, #tpu.memory_space<vmem>>, %arg4: memref<256x128xf32, #tpu.memory_space<vmem>>, %arg5: memref<1x128xf32, #tpu.memory_space<vmem>>, %arg6: memref<128x16xf32, #tpu.memory_space<vmem>>, %arg7: memref<1x16xf32, #tpu.memory_space<vmem>>, %arg8: memref<128x16xf32, #tpu.memory_space<vmem>>) attributes {dimension_semantics = [#tpu.dimension_semantics<parallel>], iteration_bounds = array<i64: 2>, scalar_prefetch = 0 : i64, scratch_operands = 0 : i64, tpu.core_type = #tpu.core_type<tc>, window_params = [{transform_indices = @transform_0, window_bounds = array<i64: 128, 32>}, {pipeline_mode = #tpu.pipeline_mode<synchronous>, transform_indices = @transform_1, window_bounds = array<i64: 32, 256>}, {pipeline_mode = #tpu.pipeline_mode<synchronous>, transform_indices = @transform_2, window_bounds = array<i64: 1, 256>}, {pipeline_mode = #tpu.pipeline_mode<synchronous>, transform_indices = @transform_3, window_bounds = array<i64: 256, 128>}, {pipeline_mode = #tpu.pipeline_mode<synchronous>, transform_indices = @transform_4, window_bounds = array<i64: 1, 128>}, {pipeline_mode = #tpu.pipeline_mode<synchronous>, transform_indices = @transform_5, window_bounds = array<i64: 128, 16>}, {pipeline_mode = #tpu.pipeline_mode<synchronous>, transform_indices = @transform_6, window_bounds = array<i64: 1, 16>}, {transform_indices = @transform_7, window_bounds = array<i64: 128, 16>}]} {
    %c0 = arith.constant 0 : index
    %c0_0 = arith.constant 0 : index
    %0 = vector.load %arg1[%c0, %c0_0] : memref<128x32xf32, #tpu.memory_space<vmem>>, vector<128x32xf32>
    %c0_1 = arith.constant 0 : index
    %c0_2 = arith.constant 0 : index
    %1 = vector.load %arg2[%c0_1, %c0_2] : memref<32x256xf32, #tpu.memory_space<vmem>>, vector<32x256xf32>
    %cst = arith.constant dense<0.000000e+00> : vector<128x256xf32>
    %2 = tpu.matmul %0, %1, %cst {dimension_numbers = #tpu.dot_dimension_numbers<[1], [0], [0], [1], [0, 0, 1, 1], [], []>} : vector<128x32xf32>, vector<32x256xf32>, vector<128x256xf32> -> vector<128x256xf32>
    %c0_3 = arith.constant 0 : index
    %c0_4 = arith.constant 0 : index
    %3 = vector.load %arg3[%c0_3, %c0_4] : memref<1x256xf32, #tpu.memory_space<vmem>>, vector<1x256xf32>
    %4 = vector.broadcast %3 : vector<1x256xf32> to vector<128x256xf32>
    %5 = arith.addf %2, %4 : vector<128x256xf32>
    %cst_5 = arith.constant 0.000000e+00 : f32
    %6 = vector.broadcast %cst_5 : f32 to vector<128x256xf32>
    %7 = arith.maximumf %5, %6 : vector<128x256xf32>
    %c0_6 = arith.constant 0 : index
    %c0_7 = arith.constant 0 : index
    %8 = vector.load %arg4[%c0_6, %c0_7] : memref<256x128xf32, #tpu.memory_space<vmem>>, vector<256x128xf32>
    %cst_8 = arith.constant dense<0.000000e+00> : vector<128x128xf32>
    %9 = tpu.matmul %7, %8, %cst_8 {dimension_numbers = #tpu.dot_dimension_numbers<[1], [0], [0], [1], [0, 0, 1, 1], [], []>} : vector<128x256xf32>, vector<256x128xf32>, vector<128x128xf32> -> vector<128x128xf32>
    %c0_9 = arith.constant 0 : index
    %c0_10 = arith.constant 0 : index
    %10 = vector.load %arg5[%c0_9, %c0_10] : memref<1x128xf32, #tpu.memory_space<vmem>>, vector<1x128xf32>
    %11 = vector.broadcast %10 : vector<1x128xf32> to vector<128x128xf32>
    %12 = arith.addf %9, %11 : vector<128x128xf32>
    %cst_11 = arith.constant 0.000000e+00 : f32
    %13 = vector.broadcast %cst_11 : f32 to vector<128x128xf32>
    %14 = arith.maximumf %12, %13 : vector<128x128xf32>
    %c0_12 = arith.constant 0 : index
    %c0_13 = arith.constant 0 : index
    %15 = vector.load %arg6[%c0_12, %c0_13] : memref<128x16xf32, #tpu.memory_space<vmem>>, vector<128x16xf32>
    %cst_14 = arith.constant dense<0.000000e+00> : vector<128x16xf32>
    %16 = tpu.matmul %14, %15, %cst_14 {dimension_numbers = #tpu.dot_dimension_numbers<[1], [0], [0], [1], [0, 0, 1, 1], [], []>} : vector<128x128xf32>, vector<128x16xf32>, vector<128x16xf32> -> vector<128x16xf32>
    %c0_15 = arith.constant 0 : index
    %c0_16 = arith.constant 0 : index
    %17 = vector.load %arg7[%c0_15, %c0_16] : memref<1x16xf32, #tpu.memory_space<vmem>>, vector<1x16xf32>
    %18 = vector.broadcast %17 : vector<1x16xf32> to vector<128x16xf32>
    %19 = arith.addf %16, %18 : vector<128x16xf32>
    %c0_17 = arith.constant 0 : index
    %c0_18 = arith.constant 0 : index
    %20 = vector.load %arg8[%c0_17, %c0_18] : memref<128x16xf32, #tpu.memory_space<vmem>>, vector<128x16xf32>
    tpu.vector_store %arg8[%c0_17, %c0_18], %19 {strides = array<i32>} : memref<128x16xf32, #tpu.memory_space<vmem>>, vector<128x16xf32>,
    return
  }
  func.func @transform_0(%arg0: i32) -> (i32, i32) {
    %c0_i32 = arith.constant 0 : i32
    %c0_i32_0 = arith.constant 0 : i32
    return %arg0, %c0_i32 : i32, i32
  }
  func.func @transform_1(%arg0: i32) -> (i32, i32) {
    %c0_i32 = arith.constant 0 : i32
    %c0_i32_0 = arith.constant 0 : i32
    %c0_i32_1 = arith.constant 0 : i32
    return %c0_i32, %c0_i32_0 : i32, i32
  }
  func.func @transform_2(%arg0: i32) -> (i32, i32) {
    %c0_i32 = arith.constant 0 : i32
    %c0_i32_0 = arith.constant 0 : i32
    %c0_i32_1 = arith.constant 0 : i32
    return %c0_i32, %c0_i32_0 : i32, i32
  }
  func.func @transform_3(%arg0: i32) -> (i32, i32) {
    %c0_i32 = arith.constant 0 : i32
    %c0_i32_0 = arith.constant 0 : i32
    %c0_i32_1 = arith.constant 0 : i32
    return %c0_i32, %c0_i32_0 : i32, i32
  }
  func.func @transform_4(%arg0: i32) -> (i32, i32) {
    %c0_i32 = arith.constant 0 : i32
    %c0_i32_0 = arith.constant 0 : i32
    %c0_i32_1 = arith.constant 0 : i32
    return %c0_i32, %c0_i32_0 : i32, i32
  }
  func.func @transform_5(%arg0: i32) -> (i32, i32) {
    %c0_i32 = arith.constant 0 : i32
    %c0_i32_0 = arith.constant 0 : i32
    %c0_i32_1 = arith.constant 0 : i32
    return %c0_i32, %c0_i32_0 : i32, i32
  }
  func.func @transform_6(%arg0: i32) -> (i32, i32) {
    %c0_i32 = arith.constant 0 : i32
    %c0_i32_0 = arith.constant 0 : i32
    %c0_i32_1 = arith.constant 0 : i32
    return %c0_i32, %c0_i32_0 : i32, i32
  }
  func.func @transform_7(%arg0: i32) -> (i32, i32) {
    %c0_i32 = arith.constant 0 : i32
    %c0_i32_0 = arith.constant 0 : i32
    return %arg0, %c0_i32 : i32, i32
  }
}

</mosaic_0001>

<bundles_post_ra>
// kernel: mlp_forward.1
= control target key start
LH: loop header
LB: loop body
LE: loop exit
PB: predicated region body
PF: predicated region fallthrough
CT: control target
= control target key end

     0   :  { %s976_s24 = smov 0   ;;  %s1331_s0 = inlined_call_operand.vmem [shape: f32[256,32], index: 0, kind: input, shape index: {}]   ;;  %s1332_s1 = inlined_call_operand.vmem [shape: f32[32,256], index: 1, kind: input, shape index: {}]   ;;  %s1333_s2 = inlined_call_operand.vmem [shape: f32[1,256], index: 2, kind: input, shape index: {}]   ;;  %s1334_s3 = inlined_call_operand.vmem [shape: f32[256,128], index: 3, kind: input, shape index: {}]   ;;  %s1335_s4 = inlined_call_operand.vmem [shape: f32[1,128], index: 4, kind: input, shape index: {}]   ;;  %s1336_s5 = inlined_call_operand.vmem [shape: f32[128,16], index: 5, kind: input, shape index: {}]   ;;  %s1337_s6 = inlined_call_operand.vmem [shape: f32[1,16], index: 6, kind: input, shape index: {}]   ;;  %s1338_s7 = inlined_call_operand.vmem [shape: f32[256,16], index: 7, kind: output, shape index: {}]  }
   0x1 LB: > { %s863_s25 = sadd.s32 4294967295, %s934_s24   ;;  %p867_p0 = scmp.ge.s32.totalorder %s934_s24, 1  ;;  %s934_s24 = sphi %s976_s24, %s17_s24  }
   0x2   : > { %p238_p1 = scmp.lt.s32.totalorder %s934_s24, 3 }
   0x4   : > { %p239_p2 = pnand %p867_p0, %p238_p1 }
   0x5   : > { %s868_s30 = sshll.u32 (!%p239_p2), %s863_s25, 4 }
   0x6   : > { %242 = sbr.rel (%p239_p2) target bundleno = 574 (0x23e), region = 48  ;;  %p271_p3 = scmp.lt.s32.totalorder (!%p239_p2), %s868_s30, 31 }
   0xb   : > { %v304_v0 = vld [vmem:[%s1332_s1 + $0x30] sm:$0xff]  ;;  %v302_v1 = vld [vmem:[%s1332_s1 + $0x20] sm:$0xff]  ;;  %s1340_s30 = smov (!%p271_p3, %s868_s30), 31  ;;  %vm312_vm0 = vcmask 261120   ;;  %v305_v4 = vld [vmem:[%s1332_s1 + $0x38] sm:$0xff]  ;;  %vm790_vm1 = vcmask 130048  }
   0xc   : > { %373 = vmatpush.msra.mxu0 %v304_v0  ;;  %906 = vmatpush.msra.mxu1 %v304_v0  ;;  %v300_v2 = vld [vmem:[%s1332_s1 + $0x10] sm:$0xff]  ;;  %v298_v3 = vld [vmem:[%s1332_s1] sm:$0xff]  ;;  %s869_s12 = sshll.u32 %s1340_s30, 3  ;;  %v303_v7 = vld [vmem:[%s1332_s1 + $0x28] sm:$0xff] }
   0xd   : > { %907 = vmatpush.msra.mxu2 %v304_v0  ;;  %908 = vmatpush.msra.mxu3 %v304_v0  ;;  %s1004_s15 = scalar_lea.vmem %s1331_s0, %s869_s12  ;;  %v301_v8 = vld [vmem:[%s1332_s1 + $0x18] sm:$0xff]  ;;  %v299_v9 = vld [vmem:[%s1332_s1 + $0x8] sm:$0xff]  ;;  %v537_v20 = vld [vmem:[%s1334_s3 + $0x70] sm:$0xff]  ;;  %s1294_s9 = scalar_lea.vmem %s1338_s7, %s869_s12 }
   0xe   : > { %374 = vmatpush.msra.mxu0 %v302_v1  ;;  %909 = vmatpush.msra.mxu1 %v302_v1  ;;  %v282_v5 = vld [vmem:[%s1004_s15] sm:$0xff]  ;;  %v283_v10 = vld [vmem:[%s1004_s15 + $0x8] sm:$0xff]  ;;  %v284_v12 = vld [vmem:[%s1004_s15 + $0x10] sm:$0xff] }
   0xf   : > { %910 = vmatpush.msra.mxu2 %v302_v1  ;;  %911 = vmatpush.msra.mxu3 %v302_v1  ;;  %v286_v6 = vld [vmem:[%s1004_s15 + $0x20] sm:$0xff]  ;;  %v287_v11 = vld [vmem:[%s1004_s15 + $0x28] sm:$0xff]  ;;  %v288_v13 = vld [vmem:[%s1004_s15 + $0x30] sm:$0xff] }
  0x10   : > { %375 = vmatpush.msra.mxu0 %v300_v2  ;;  %912 = vmatpush.msra.mxu1 %v300_v2  ;;  %v285_v14 = vld [vmem:[%s1004_s15 + $0x18] sm:$0xff]  ;;  %v290_v16 = vld [vmem:[%s1004_s15 + $0x40] sm:$0xff]  ;;  %v291_v17 = vld [vmem:[%s1004_s15 + $0x48] sm:$0xff] }
  0x11   : > { %913 = vmatpush.msra.mxu2 %v300_v2  ;;  %914 = vmatpush.msra.mxu3 %v300_v2  ;;  %v289_v15 = vld [vmem:[%s1004_s15 + $0x38] sm:$0xff]  ;;  %v1043_v18 = vld [vmem:[%s1004_s15 + $0x50] sm:$0xff]  ;;  %v536_v21 = vld [vmem:[%s1334_s3 + $0x68] sm:$0xff] }
  0x12   : > { %376 = vmatpush.msra.mxu0 %v298_v3  ;;  %915 = vmatpush.msra.mxu1 %v298_v3  ;;  %v538_v19 = vld [vmem:[%s1334_s3 + $0x78] sm:$0xff]  ;;  %v535_v22 = vld [vmem:[%s1334_s3 + $0x60] sm:$0xff]  ;;  %v533_v25 = vld [vmem:[%s1334_s3 + $0x50] sm:$0xff] }
  0x13   : > { %872 = vmatmul.msk.f32.vlgmr.msra.gmra.mxu0 %vm312_vm0, %v282_v5  ;;  %876 = vmatmul.msk.f32.vlgmr.msra.gmra.mxu1 %vm312_vm0, %v286_v6  ;;  %v1061_v23 = vld [vmem:[%s1004_s15 + $0x58] sm:$0xff]  ;;  %v532_v26 = vld [vmem:[%s1334_s3 + $0x48] sm:$0xff]  ;;  %v531_v27 = vld [vmem:[%s1334_s3 + $0x40] sm:$0xff] }
  0x14   : > { %438 = vmatpush.msrb.mxu1 %v305_v4  ;;  %916 = vmatpush.msra.mxu2 %v298_v3  ;;  %v534_v24 = vld [vmem:[%s1334_s3 + $0x58] sm:$0xff]  ;;  %v1079_v28 = vld [vmem:[%s1004_s15 + $0x60] sm:$0xff]  ;;  %v529_v30 = vld [vmem:[%s1334_s3 + $0x30] sm:$0xff] }
  0x15   : > { %917 = vmatpush.msra.mxu3 %v298_v3  ;;  %881 = vmatmul.msk.f32.vlgmr.msra.gmra.mxu2 %vm312_vm0, %v291_v17  ;;  %v530_v29 = vld [vmem:[%s1334_s3 + $0x38] sm:$0xff]  ;;  %v528_v31 = vld [vmem:[%s1334_s3 + $0x28] sm:$0xff]  ;;  %v527_v32 = vld [vmem:[%s1334_s3 + $0x20] sm:$0xff] }
  0x16   : > { %439 = vmatpush.msrb.mxu1 %v303_v7  ;;  %559 = vmatpush.msrb.mxu2 %v538_v19  ;;  %v1097_v33 = vld [vmem:[%s1004_s15 + $0x68] sm:$0xff]  ;;  %v526_v34 = vld [vmem:[%s1334_s3 + $0x18] sm:$0xff]  ;;  %v525_v35 = vld [vmem:[%s1334_s3 + $0x10] sm:$0xff] }
  0x17   : > { %v524_v36 = vld [vmem:[%s1334_s3 + $0x8] sm:$0xff]  ;;  %v523_v37 = vld [vmem:[%s1334_s3] sm:$0xff]  ;;  %v554_v38 = vld [vmem:[%s1334_s3 + $0xf8] sm:$0xff] }
  0x18   : > { %440 = vmatpush.msrb.mxu1 %v301_v8  ;;  %560 = vmatpush.msrb.mxu2 %v537_v20  ;;  %v553_v39 = vld [vmem:[%s1334_s3 + $0xf0] sm:$0xff]  ;;  %v552_v40 = vld [vmem:[%s1334_s3 + $0xe8] sm:$0xff]  ;;  %v551_v42 = vld [vmem:[%s1334_s3 + $0xe0] sm:$0xff] }
  0x19   : > { %624 = vmatpush.msrb.mxu3 %v554_v38  ;;  %v296_v41 = vld [vmem:[%s1004_s15 + $0x70] sm:$0xff]  ;;  %v550_v43 = vld [vmem:[%s1334_s3 + $0xd8] sm:$0xff]  ;;  %v548_v45 = vld [vmem:[%s1334_s3 + $0xc8] sm:$0xff] }
  0x1a   : > { %441 = vmatpush.msrb.mxu1 %v299_v9  ;;  %561 = vmatpush.msrb.mxu2 %v536_v21  ;;  %v549_v44 = vld [vmem:[%s1334_s3 + $0xd0] sm:$0xff]  ;;  %v306_v46 = vld [vmem:[%s1333_s2] sm:$0x3]  ;;  %v297_v47 = vld [vmem:[%s1004_s15 + $0x78] sm:$0xff] }
  0x1b   : > { %873 = vmatmul.msk.f32.gmra.mxu0 %vm312_vm0, %v283_v10  ;;  %877 = vmatmul.msk.f32.gmra.mxu1 %vm312_vm0, %v287_v11  ;;  %v547_v48 = vld [vmem:[%s1334_s3 + $0xc0] sm:$0xff]  ;;  %v1149_v49 = vperm.slane %v306_v46, 0  ;;  %v546_v50 = vld [vmem:[%s1334_s3 + $0xb8] sm:$0xff]  ;;  %v545_v51 = vld [vmem:[%s1334_s3 + $0xb0] sm:$0xff] }
  0x1c   : > { %562 = vmatpush.msrb.mxu2 %v535_v22  ;;  %625 = vmatpush.msrb.mxu3 %v553_v39  ;;  %v544_v55 = vld [vmem:[%s1334_s3 + $0xa8] sm:$0xff]  ;;  %v543_v57 = vld [vmem:[%s1334_s3 + $0xa0] sm:$0xff]  ;;  %v542_v58 = vld [vmem:[%s1334_s3 + $0x98] sm:$0xff] }
  0x1d   : > { %882 = vmatmul.msk.f32.gmra.mxu2 %vm312_vm0, %v1043_v18  ;;  %886 = vmatmul.msk.f32.vlgmr.msra.gmra.mxu3 %vm312_vm0, %v296_v41  ;;  %v541_v59 = vld [vmem:[%s1334_s3 + $0x90] sm:$0xff]  ;;  %v540_v63 = vld [vmem:[%s1334_s3 + $0x88] sm:$0xff]  ;;  %v539_v1 = vld [vmem:[%s1334_s3 + $0x80] sm:$0xff] }
  0x1e   : > { %563 = vmatpush.msrb.mxu2 %v534_v24  ;;  %626 = vmatpush.msrb.mxu3 %v552_v40 }
  0x20   : > { %564 = vmatpush.msrb.mxu2 %v533_v25  ;;  %627 = vmatpush.msrb.mxu3 %v551_v42 }
  0x22   : > { %565 = vmatpush.msrb.mxu2 %v532_v26  ;;  %628 = vmatpush.msrb.mxu3 %v550_v43 }
  0x23   : > { %874 = vmatmul.msk.f32.gmra.mxu0 %vm312_vm0, %v284_v12  ;;  %878 = vmatmul.msk.f32.gmra.mxu1 %vm312_vm0, %v288_v13 }
  0x24   : > { %566 = vmatpush.msrb.mxu2 %v531_v27  ;;  %629 = vmatpush.msrb.mxu3 %v549_v44 }
  0x25   : > { %883 = vmatmul.msk.f32.gmra.mxu2 %vm312_vm0, %v1061_v23  ;;  %887 = vmatmul.msk.f32.gmra.mxu3 %vm312_vm0, %v297_v47 }
  0x26   : > { %567 = vmatpush.msrb.mxu2 %v530_v29  ;;  %630 = vmatpush.msrb.mxu3 %v548_v45 }
  0x28   : > { %568 = vmatpush.msrb.mxu2 %v529_v30  ;;  %631 = vmatpush.msrb.mxu3 %v547_v48 }
  0x2a   : > { %569 = vmatpush.msrb.mxu2 %v528_v31  ;;  %632 = vmatpush.msrb.mxu3 %v546_v50 }
  0x2b   : > { %875 = vmatmul.msk.f32.gmra.mxu0 %vm312_vm0, %v285_v14  ;;  %879 = vmatmul.msk.f32.gmra.mxu1 %vm312_vm0, %v289_v15 }
  0x2c   : > { %570 = vmatpush.msrb.mxu2 %v527_v32  ;;  %633 = vmatpush.msrb.mxu3 %v545_v51 }
  0x2d   : > { %884 = vmatmul.msk.f32.gmra.mxu2 %vm312_vm0, %v1079_v28 }
  0x2e   : > { %571 = vmatpush.msrb.mxu2 %v526_v34  ;;  %634 = vmatpush.msrb.mxu3 %v544_v55 }
  0x30   : > { %572 = vmatpush.msrb.mxu2 %v525_v35  ;;  %635 = vmatpush.msrb.mxu3 %v543_v57 }
  0x32   : > { %573 = vmatpush.msrb.mxu2 %v524_v36  ;;  %636 = vmatpush.msrb.mxu3 %v542_v58 }
  0x33   : > { %880 = vmatmul.msk.f32.gmra.mxu1 %vm312_vm0, %v290_v16 }
  0x34   : > { %574 = vmatpush.msrb.mxu2 %v523_v37  ;;  %637 = vmatpush.msrb.mxu3 %v541_v59 }
  0x35   : > { %885 = vmatmul.msk.f32.gmra.mxu2 %vm312_vm0, %v1097_v33 }
  0x36   : > { %638 = vmatpush.msrb.mxu3 %v540_v63 }
  0x38   : > { %639 = vmatpush.msrb.mxu3 %v539_v1 }
  0x3b   : > { %888 = vmatmul.msk.f32.vlgmr.msrb.gmra.mxu1 %vm312_vm0, %v282_v5 }
  0x43   : > { %889 = vmatmul.msk.f32.gmra.mxu1 %vm312_vm0, %v283_v10 }
  0x4b   : > { %890 = vmatmul.msk.f32.gmra.mxu1 %vm312_vm0, %v284_v12 }
  0x53   : > { %891 = vmatmul.msk.f32.gmra.mxu1 %vm312_vm0, %v285_v14 }
  0x5b   : > { %892 = vmatmul.msk.f32.gmra.mxu1 %vm312_vm0, %v286_v6 }
  0x63   : > { %893 = vmatmul.msk.f32.gmra.mxu1 %vm312_vm0, %v287_v11 }
  0x6b   : > { %894 = vmatmul.msk.f32.gmra.mxu1 %vm312_vm0, %v288_v13  ;;  %v1188_v13 = vperm.slane %v306_v46, 1 }
  0x73   : > { %895 = vmatmul.msk.f32.gmra.mxu1 %vm312_vm0, %v289_v15 }
  0x7b   : > { %896 = vmatmul.msk.f32.gmra.mxu1 %vm312_vm0, %v290_v16 }
  0x83   : > { %897 = vmatmul.msk.f32.gmra.mxu1 %vm312_vm0, %v291_v17 }
  0x8b   : > { %898 = vmatmul.msk.f32.gmra.mxu1 %vm312_vm0, %v1043_v18 }
  0x90   : > { %v378_v52 = vpop.f32.mrf.mxu0  ;;  %v390_v53 = vpop.f32.mrf.mxu1 }
  0x91   : > { %v379_v54 = vadd.f32 %v378_v52, %v1149_v49  ;;  %v391_v10 = vadd.f32 %v390_v53, %v1149_v49 }
  0x93   : > { %v491_v56 = vmax.f32 %v379_v54, 0.0  ;;  %899 = vmatmul.msk.f32.gmra.mxu1 %vm312_vm0, %v1061_v23  ;;  %v499_v12 = vmax.f32 %v391_v10, 0.0 }
  0x95   : > { %575 = vmatmul.f32.vlgmr.msrb.gmra.mxu2 %v491_v56 }
  0x98   : > { %v381_v60 = vpop.f32.mrf.mxu0  ;;  %v393_v61 = vpop.f32.mrf.mxu1 }
  0x99   : > { %v382_v62 = vadd.f32 %v381_v60, %v1149_v49  ;;  %v394_v14 = vadd.f32 %v393_v61, %v1149_v49  ;;  %v405_v30 = vpop.f32.mrf.mxu2 }
  0x9a   : > { %v406_v35 = vadd.f32 %v405_v30, %v1149_v49 }
  0x9b   : > { %v493_v0 = vmax.f32 %v382_v62, 0.0  ;;  %900 = vmatmul.msk.f32.gmra.mxu1 %vm312_vm0, %v1079_v28  ;;  %v501_v17 = vmax.f32 %v394_v14, 0.0  ;;  %v717_v14 = vld [vmem:[%s1336_s5 + $0x60] sm:$0xff] }
  0x9c   : > { %v509_v39 = vmax.f32 %v406_v35, 0.0 }
  0x9d   : > { %578 = vmatmul.f32.gmra.mxu2 %v493_v0 }
  0xa0   : > { %v384_v2 = vpop.f32.mrf.mxu0  ;;  %v396_v3 = vpop.f32.mrf.mxu1 }
  0xa1   : > { %v385_v4 = vadd.f32 %v384_v2, %v1149_v49  ;;  %v397_v19 = vadd.f32 %v396_v3, %v1149_v49  ;;  %v408_v36 = vpop.f32.mrf.mxu2 }
  0xa3   : > { %v495_v5 = vmax.f32 %v385_v4, 0.0  ;;  %901 = vmatmul.msk.f32.gmra.mxu1 %vm312_vm0, %v1097_v33  ;;  %v503_v22 = vmax.f32 %v397_v19, 0.0  ;;  %v720_v4 = vld [vmem:[%s1336_s5 + $0x78] sm:$0xff] }
  0xa4   : > { %725 = vmatpush.msrb.mxu0 %v720_v4 }
  0xa5   : > { %581 = vmatmul.f32.gmra.mxu2 %v495_v5  ;;  %v719_v5 = vld [vmem:[%s1336_s5 + $0x70] sm:$0xff] }
  0xa6   : > { %726 = vmatpush.msrb.mxu0 %v719_v5 }
  0xa8   : > { %v387_v6 = vpop.f32.mrf.mxu0  ;;  %v399_v7 = vpop.f32.mrf.mxu1 }
  0xa9   : > { %v388_v8 = vadd.f32 %v387_v6, %v1149_v49  ;;  %v400_v24 = vadd.f32 %v399_v7, %v1149_v49  ;;  %v411_v43 = vpop.f32.mrf.mxu2  ;;  %v420_v6 = vpop.f32.mrf.mxu3 }
  0xaa   : > { %v421_v7 = vadd.f32 %v420_v6, %v1149_v49 }
  0xab   : > { %v497_v9 = vmax.f32 %v388_v8, 0.0  ;;  %902 = vmatmul.msk.f32.gmra.mxu1 %vm312_vm0, %v296_v41  ;;  %v505_v27 = vmax.f32 %v400_v24, 0.0  ;;  %v409_v41 = vadd.f32 %v408_v36, %v1149_v49  ;;  %v713_v24 = vld [vmem:[%s1336_s5 + $0x40] sm:$0xff]  ;;  %v706_v36 = vld [vmem:[%s1336_s5 + $0x8] sm:$0xff] }
  0xac   : > { %v519_v10 = vmax.f32 %v421_v7, 0.0 }
  0xad   : > { %584 = vmatmul.f32.gmra.mxu2 %v497_v9  ;;  %v511_v45 = vmax.f32 %v409_v41, 0.0 }
  0xb0   : > { %v402_v11 = vpop.f32.mrf.mxu1 }
  0xb1   : > { %v403_v29 = vadd.f32 %v402_v11, %v1149_v49  ;;  %v414_v52 = vpop.f32.mrf.mxu2  ;;  %v718_v11 = vld [vmem:[%s1336_s5 + $0x68] sm:$0xff] }
  0xb2   : > { %v415_v54 = vadd.f32 %v414_v52, %v1149_v49  ;;  %727 = vmatpush.msrb.mxu0 %v718_v11 }
  0xb3   : > { %903 = vmatmul.msk.f32.gmra.mxu1 %vm312_vm0, %v297_v47  ;;  %v507_v33 = vmax.f32 %v403_v29, 0.0  ;;  %v412_v47 = vadd.f32 %v411_v43, %v1149_v49  ;;  %v709_v29 = vld [vmem:[%s1336_s5 + $0x20] sm:$0xff] }
  0xb4   : > { %v515_v57 = vmax.f32 %v415_v54, 0.0  ;;  %728 = vmatpush.msrb.mxu0 %v717_v14 }
  0xb5   : > { %587 = vmatmul.f32.gmra.mxu2 %v499_v12  ;;  %v513_v51 = vmax.f32 %v412_v47, 0.0  ;;  %v1268_v47 = vld [vmem:[%s1335_s4] ss:$0 sm:$0xff] }
  0xb8   : > { %v443_v15 = vpop.f32.mrf.mxu1 }
  0xb9   : > { %v444_v16 = vadd.f32 %v443_v15, %v1188_v13  ;;  %v417_v59 = vpop.f32.mrf.mxu2  ;;  %v716_v15 = vld [vmem:[%s1336_s5 + $0x58] sm:$0xff] }
  0xba   : > { %v418_v60 = vadd.f32 %v417_v59, %v1149_v49  ;;  %729 = vmatpush.msrb.mxu0 %v716_v15 }
  0xbb   : > { %v492_v18 = vmax.f32 %v444_v16, 0.0  ;;  %v715_v16 = vld [vmem:[%s1336_s5 + $0x50] sm:$0xff] }
  0xbc   : > { %v517_v63 = vmax.f32 %v418_v60, 0.0  ;;  %730 = vmatpush.msrb.mxu0 %v715_v16 }
  0xbd   : > { %590 = vmatmul.f32.gmra.mxu2 %v501_v17  ;;  %640 = vmatmul.f32.vlgmr.msrb.gmra.mxu3 %v492_v18  ;;  %v423_v17 = vpop.f32.mrf.mxu3 }
  0xbe   : > { %v424_v18 = vadd.f32 %v423_v17, %v1149_v49  ;;  %v712_v49 = vld [vmem:[%s1336_s5 + $0x38] sm:$0xff] }
  0xc0   : > { %v446_v20 = vpop.f32.mrf.mxu1 }
  0xc1   : > { %v447_v21 = vadd.f32 %v446_v20, %v1188_v13 }
  0xc3   : > { %v494_v23 = vmax.f32 %v447_v21, 0.0  ;;  %v521_v21 = vmax.f32 %v424_v18, 0.0 }
  0xc5   : > { %593 = vmatmul.f32.gmra.mxu2 %v503_v22  ;;  %643 = vmatmul.f32.gmra.mxu3 %v494_v23  ;;  %v714_v22 = vld [vmem:[%s1336_s5 + $0x48] sm:$0xff] }
  0xc6   : > { %731 = vmatpush.msrb.mxu0 %v714_v22 }
  0xc8   : > { %v449_v25 = vpop.f32.mrf.mxu1  ;;  %732 = vmatpush.msrb.mxu0 %v713_v24 }
  0xc9   : > { %v450_v26 = vadd.f32 %v449_v25, %v1188_v13  ;;  %v711_v25 = vld [vmem:[%s1336_s5 + $0x30] sm:$0xff] }
  0xca   : > { %733 = vmatpush.msrb.mxu0 %v712_v49 }
  0xcb   : > { %v496_v28 = vmax.f32 %v450_v26, 0.0 }
  0xcc   : > { %734 = vmatpush.msrb.mxu0 %v711_v25 }
  0xcd   : > { %596 = vmatmul.f32.gmra.mxu2 %v505_v27  ;;  %646 = vmatmul.f32.gmra.mxu3 %v496_v28  ;;  %v710_v28 = vld [vmem:[%s1336_s5 + $0x28] sm:$0xff] }
  0xce   : > { %735 = vmatpush.msrb.mxu0 %v710_v28 }
  0xd0   : > { %v452_v31 = vpop.f32.mrf.mxu1  ;;  %736 = vmatpush.msrb.mxu0 %v709_v29 }
  0xd1   : > { %v453_v32 = vadd.f32 %v452_v31, %v1188_v13  ;;  %v708_v31 = vld [vmem:[%s1336_s5 + $0x18] sm:$0xff] }
  0xd2   : > { %737 = vmatpush.msrb.mxu0 %v708_v31 }
  0xd3   : > { %v498_v34 = vmax.f32 %v453_v32, 0.0  ;;  %v707_v32 = vld [vmem:[%s1336_s5 + $0x10] sm:$0xff] }
  0xd4   : > { %738 = vmatpush.msrb.mxu0 %v707_v32 }
  0xd5   : > { %599 = vmatmul.f32.gmra.mxu2 %v507_v33  ;;  %649 = vmatmul.f32.gmra.mxu3 %v498_v34 }
  0xd6   : > { %739 = vmatpush.msrb.mxu0 %v706_v36 }
  0xd8   : > { %v455_v37 = vpop.f32.mrf.mxu1 }
  0xd9   : > { %v456_v38 = vadd.f32 %v455_v37, %v1188_v13 }
  0xdb   : > { %v500_v40 = vmax.f32 %v456_v38, 0.0  ;;  %v705_v38 = vld [vmem:[%s1336_s5] sm:$0xff] }
  0xdc   : > { %740 = vmatpush.msrb.mxu0 %v705_v38 }
  0xdd   : > { %652 = vmatmul.f32.gmra.mxu3 %v500_v40  ;;  %602 = vmatmul.f32.gmra.mxu2 %v509_v39 }
  0xe0   : > { %v458_v42 = vpop.f32.mrf.mxu1 }
  0xe1   : > { %v459_v44 = vadd.f32 %v458_v42, %v1188_v13 }
  0xe3   : > { %v502_v46 = vmax.f32 %v459_v44, 0.0 }
  0xe5   : > { %655 = vmatmul.f32.gmra.mxu3 %v502_v46  ;;  %605 = vmatmul.f32.gmra.mxu2 %v511_v45 }
  0xe8   : > { %v461_v48 = vpop.f32.mrf.mxu1 }
  0xe9   : > { %v462_v50 = vadd.f32 %v461_v48, %v1188_v13 }
  0xeb   : > { %v504_v53 = vmax.f32 %v462_v50, 0.0 }
  0xed   : > { %658 = vmatmul.f32.gmra.mxu3 %v504_v53  ;;  %608 = vmatmul.f32.gmra.mxu2 %v513_v51 }
  0xf0   : > { %v464_v55 = vpop.f32.mrf.mxu1 }
  0xf1   : > { %v465_v56 = vadd.f32 %v464_v55, %v1188_v13 }
  0xf3   : > { %v506_v58 = vmax.f32 %v465_v56, 0.0 }
  0xf5   : > { %661 = vmatmul.f32.gmra.mxu3 %v506_v58  ;;  %611 = vmatmul.f32.gmra.mxu2 %v515_v57 }
  0xf8   : > { %v467_v61 = vpop.f32.mrf.mxu1 }
  0xf9   : > { %v468_v62 = vadd.f32 %v467_v61, %v1188_v13 }
  0xfb   : > { %v508_v0 = vmax.f32 %v468_v62, 0.0 }
  0xfd   : > { %664 = vmatmul.f32.gmra.mxu3 %v508_v0  ;;  %614 = vmatmul.f32.gmra.mxu2 %v517_v63 }
 0x100   : > { %v470_v1 = vpop.f32.mrf.mxu1 }
 0x101   : > { %v471_v2 = vadd.f32 %v470_v1, %v1188_v13 }
 0x103   : > { %v510_v3 = vmax.f32 %v471_v2, 0.0 }
 0x105   : > { %667 = vmatmul.f32.gmra.mxu3 %v510_v3  ;;  %617 = vmatmul.f32.gmra.mxu2 %v519_v10 }
 0x108   : > { %v473_v8 = vpop.f32.mrf.mxu1 }
 0x109   : > { %v474_v9 = vadd.f32 %v473_v8, %v1188_v13 }
 0x10b   : > { %v512_v12 = vmax.f32 %v474_v9, 0.0 }
 0x10d   : > { %670 = vmatmul.f32.gmra.mxu3 %v512_v12  ;;  %620 = vmatmul.f32.gmra.mxu2 %v521_v21 }
 0x110   : > { %v476_v19 = vpop.f32.mrf.mxu1 }
 0x111   : > { %v477_v20 = vadd.f32 %v476_v19, %v1188_v13 }
 0x113   : > { %v514_v23 = vmax.f32 %v477_v20, 0.0 }
 0x115   : > { %673 = vmatmul.f32.gmra.mxu3 %v514_v23 }
 0x118   : > { %v479_v26 = vpop.f32.mrf.mxu1  ;;  %v576_v33 = vpop.f32.mrf.mxu2 }
 0x119   : > { %v480_v27 = vadd.f32 %v479_v26, %v1188_v13  ;;  %v577_v50 = vadd.f32 %v1268_v47, %v576_v33 }
 0x11b   : > { %v516_v30 = vmax.f32 %v480_v27, 0.0 }
 0x11d   : > { %676 = vmatmul.f32.gmra.mxu3 %v516_v30 }
 0x120   : > { %v482_v34 = vpop.f32.mrf.mxu1  ;;  %v579_v39 = vpop.f32.mrf.mxu2 }
 0x121   : > { %v483_v35 = vadd.f32 %v482_v34, %v1188_v13  ;;  %v580_v54 = vadd.f32 %v1268_v47, %v579_v39 }
 0x123   : > { %v518_v37 = vmax.f32 %v483_v35, 0.0 }
 0x125   : > { %679 = vmatmul.f32.gmra.mxu3 %v518_v37 }
 0x128   : > { %v485_v40 = vpop.f32.mrf.mxu1  ;;  %v582_v45 = vpop.f32.mrf.mxu2 }
 0x129   : > { %v486_v41 = vadd.f32 %v485_v40, %v1188_v13  ;;  %v583_v58 = vadd.f32 %v1268_v47, %v582_v45 }
 0x12b   : > { %v520_v42 = vmax.f32 %v486_v41, 0.0 }
 0x12d   : > { %682 = vmatmul.f32.gmra.mxu3 %v520_v42 }
 0x130   : > { %v488_v43 = vpop.f32.mrf.mxu1  ;;  %v585_v48 = vpop.f32.mrf.mxu2 }
 0x131   : > { %v489_v44 = vadd.f32 %v488_v43, %v1188_v13  ;;  %v586_v63 = vadd.f32 %v1268_v47, %v585_v48 }
 0x133   : > { %v522_v46 = vmax.f32 %v489_v44, 0.0 }
 0x135   : > { %685 = vmatmul.f32.gmra.mxu3 %v522_v46 }
 0x138   : > { %v588_v55 = vpop.f32.mrf.mxu2 }
 0x139   : > { %v589_v4 = vadd.f32 %v1268_v47, %v588_v55 }
 0x140   : > { %v641_v51 = vpop.f32.mrf.mxu3  ;;  %v591_v59 = vpop.f32.mrf.mxu2 }
 0x141   : > { %v642_v52 = vadd.f32 %v641_v51, %v577_v50  ;;  %v592_v9 = vadd.f32 %v1268_v47, %v591_v59 }
 0x143   : > { %v689_v53 = vmax.f32 %v642_v52, 0.0 }
 0x145   : > { %741 = vmatmul.f32.vlgmr.msrb.gmra.mxu0 %v689_v53 }
 0x148   : > { %v644_v56 = vpop.f32.mrf.mxu3  ;;  %v594_v2 = vpop.f32.mrf.mxu2 }
 0x149   : > { %v645_v13 = vadd.f32 %v644_v56, %v580_v54  ;;  %v595_v15 = vadd.f32 %v1268_v47, %v594_v2 }
 0x14b   : > { %v690_v57 = vmax.f32 %v645_v13, 0.0 }
 0x14d   : > { %744 = vmatmul.f32.gmra.mxu0 %v690_v57 }
 0x150   : > { %v647_v60 = vpop.f32.mrf.mxu3  ;;  %v597_v8 = vpop.f32.mrf.mxu2 }
 0x151   : > { %v648_v61 = vadd.f32 %v647_v60, %v583_v58  ;;  %v598_v20 = vadd.f32 %v1268_v47, %v597_v8 }
 0x153   : > { %v691_v62 = vmax.f32 %v648_v61, 0.0 }
 0x155   : > { %747 = vmatmul.f32.gmra.mxu0 %v691_v62  ;;  %v927_v62 = vld [vmem:[%s1337_s6] ss:$0 sm:$0xff] }
 0x158   : > { %v650_v0 = vpop.f32.mrf.mxu3  ;;  %v600_v14 = vpop.f32.mrf.mxu2 }
 0x159   : > { %v651_v1 = vadd.f32 %v650_v0, %v586_v63  ;;  %v601_v24 = vadd.f32 %v1268_v47, %v600_v14 }
 0x15b   : > { %v692_v3 = vmax.f32 %v651_v1, 0.0 }
 0x15d   : > { %750 = vmatmul.f32.gmra.mxu0 %v692_v3 }
 0x160   : > { %v653_v5 = vpop.f32.mrf.mxu3  ;;  %v603_v19 = vpop.f32.mrf.mxu2 }
 0x161   : > { %v654_v6 = vadd.f32 %v653_v5, %v589_v4  ;;  %v604_v28 = vadd.f32 %v1268_v47, %v603_v19 }
 0x163   : > { %v693_v7 = vmax.f32 %v654_v6, 0.0 }
 0x165   : > { %753 = vmatmul.f32.gmra.mxu0 %v693_v7 }
 0x168   : > { %v656_v10 = vpop.f32.mrf.mxu3  ;;  %v606_v25 = vpop.f32.mrf.mxu2 }
 0x169   : > { %v657_v11 = vadd.f32 %v656_v10, %v592_v9  ;;  %v607_v33 = vadd.f32 %v1268_v47, %v606_v25 }
 0x16b   : > { %v694_v12 = vmax.f32 %v657_v11, 0.0 }
 0x16d   : > { %756 = vmatmul.f32.gmra.mxu0 %v694_v12 }
 0x170   : > { %v659_v16 = vpop.f32.mrf.mxu3  ;;  %v609_v31 = vpop.f32.mrf.mxu2 }
 0x171   : > { %v660_v17 = vadd.f32 %v659_v16, %v595_v15  ;;  %v610_v38 = vadd.f32 %v1268_v47, %v609_v31 }
 0x173   : > { %v695_v18 = vmax.f32 %v660_v17, 0.0 }
 0x175   : > { %759 = vmatmul.f32.gmra.mxu0 %v695_v18 }
 0x178   : > { %v662_v21 = vpop.f32.mrf.mxu3  ;;  %v612_v37 = vpop.f32.mrf.mxu2 }
 0x179   : > { %v663_v22 = vadd.f32 %v662_v21, %v598_v20  ;;  %v613_v42 = vadd.f32 %v1268_v47, %v612_v37 }
 0x17b   : > { %v696_v23 = vmax.f32 %v663_v22, 0.0 }
 0x17d   : > { %762 = vmatmul.f32.gmra.mxu0 %v696_v23 }
 0x180   : > { %v665_v49 = vpop.f32.mrf.mxu3  ;;  %v615_v43 = vpop.f32.mrf.mxu2 }
 0x181   : > { %v666_v26 = vadd.f32 %v665_v49, %v601_v24  ;;  %v616_v48 = vadd.f32 %v1268_v47, %v615_v43 }
 0x183   : > { %v697_v27 = vmax.f32 %v666_v26, 0.0 }
 0x185   : > { %765 = vmatmul.f32.gmra.mxu0 %v697_v27 }
 0x188   : > { %v668_v29 = vpop.f32.mrf.mxu3  ;;  %v618_v51 = vpop.f32.mrf.mxu2 }
 0x189   : > { %v669_v30 = vadd.f32 %v668_v29, %v604_v28  ;;  %v619_v54 = vadd.f32 %v1268_v47, %v618_v51 }
 0x18b   : > { %v698_v32 = vmax.f32 %v669_v30, 0.0 }
 0x18d   : > { %768 = vmatmul.f32.gmra.mxu0 %v698_v32 }
 0x190   : > { %v671_v34 = vpop.f32.mrf.mxu3  ;;  %v621_v13 = vpop.f32.mrf.mxu2 }
 0x191   : > { %v672_v35 = vadd.f32 %v671_v34, %v607_v33  ;;  %v622_v58 = vadd.f32 %v1268_v47, %v621_v13 }
 0x193   : > { %v699_v36 = vmax.f32 %v672_v35, 0.0 }
 0x195   : > { %771 = vmatmul.f32.gmra.mxu0 %v699_v36 }
 0x198   : > { %v674_v39 = vpop.f32.mrf.mxu3 }
 0x199   : > { %v675_v40 = vadd.f32 %v674_v39, %v610_v38 }
 0x19b   : > { %v700_v41 = vmax.f32 %v675_v40, 0.0 }
 0x19d   : > { %774 = vmatmul.f32.gmra.mxu0 %v700_v41 }
 0x1a0   : > { %v677_v44 = vpop.f32.mrf.mxu3 }
 0x1a1   : > { %v678_v45 = vadd.f32 %v677_v44, %v613_v42 }
 0x1a3   : > { %v701_v46 = vmax.f32 %v678_v45, 0.0 }
 0x1a5   : > { %777 = vmatmul.f32.gmra.mxu0 %v701_v46 }
 0x1a8   : > { %v680_v50 = vpop.f32.mrf.mxu3 }
 0x1a9   : > { %v681_v52 = vadd.f32 %v680_v50, %v616_v48 }
 0x1ab   : > { %v702_v53 = vmax.f32 %v681_v52, 0.0 }
 0x1ad   : > { %780 = vmatmul.f32.gmra.mxu0 %v702_v53 }
 0x1b0   : > { %v683_v55 = vpop.f32.mrf.mxu3 }
 0x1b1   : > { %v684_v56 = vadd.f32 %v683_v55, %v619_v54 }
 0x1b3   : > { %v703_v57 = vmax.f32 %v684_v56, 0.0 }
 0x1b5   : > { %783 = vmatmul.f32.gmra.mxu0 %v703_v57 }
 0x1b8   : > { %v686_v59 = vpop.f32.mrf.mxu3 }
 0x1b9   : > { %v687_v60 = vadd.f32 %v686_v59, %v622_v58 }
 0x1bb   : > { %v704_v61 = vmax.f32 %v687_v60, 0.0 }
 0x1bd   : > { %786 = vmatmul.f32.gmra.mxu0 %v704_v61 }
 0x1c2   : > { %v742_v47 = vpop.f32.mrf.mxu0 }
 0x1c3   : > { %v743_v63 = vadd.f32 %v927_v62, %v742_v47 }
 0x1c5   : > { %791 = vst.msk [vmem:[%s1294_s9] sm:$0xff] %vm790_vm1, %v743_v63 }
 0x1ca   : > { %v745_v0 = vpop.f32.mrf.mxu0 }
 0x1cb   : > { %v746_v1 = vadd.f32 %v927_v62, %v745_v0 }
 0x1cd   : > { %792 = vst.msk [vmem:[%s1294_s9 + $0x8] sm:$0xff] %vm790_vm1, %v746_v1 }
 0x1d2   : > { %v748_v2 = vpop.f32.mrf.mxu0 }
 0x1d3   : > { %v749_v3 = vadd.f32 %v927_v62, %v748_v2 }
 0x1d5   : > { %793 = vst.msk [vmem:[%s1294_s9 + $0x10] sm:$0xff] %vm790_vm1, %v749_v3 }
 0x1da   : > { %v751_v4 = vpop.f32.mrf.mxu0 }
 0x1db   : > { %v752_v5 = vadd.f32 %v927_v62, %v751_v4 }
 0x1dd   : > { %794 = vst.msk [vmem:[%s1294_s9 + $0x18] sm:$0xff] %vm790_vm1, %v752_v5 }
 0x1e2   : > { %v754_v6 = vpop.f32.mrf.mxu0 }
 0x1e3   : > { %v755_v7 = vadd.f32 %v927_v62, %v754_v6 }
 0x1e5   : > { %795 = vst.msk [vmem:[%s1294_s9 + $0x20] sm:$0xff] %vm790_vm1, %v755_v7 }
 0x1ea   : > { %v757_v8 = vpop.f32.mrf.mxu0 }
 0x1eb   : > { %v758_v9 = vadd.f32 %v927_v62, %v757_v8 }
 0x1ed   : > { %796 = vst.msk [vmem:[%s1294_s9 + $0x28] sm:$0xff] %vm790_vm1, %v758_v9 }
 0x1f2   : > { %v760_v10 = vpop.f32.mrf.mxu0 }
 0x1f3   : > { %v761_v11 = vadd.f32 %v927_v62, %v760_v10 }
 0x1f5   : > { %797 = vst.msk [vmem:[%s1294_s9 + $0x30] sm:$0xff] %vm790_vm1, %v761_v11 }
 0x1fa   : > { %v763_v12 = vpop.f32.mrf.mxu0 }
 0x1fb   : > { %v764_v14 = vadd.f32 %v927_v62, %v763_v12 }
 0x1fd   : > { %798 = vst.msk [vmem:[%s1294_s9 + $0x38] sm:$0xff] %vm790_vm1, %v764_v14 }
 0x202   : > { %v766_v15 = vpop.f32.mrf.mxu0 }
 0x203   : > { %v767_v16 = vadd.f32 %v927_v62, %v766_v15 }
 0x205   : > { %799 = vst.msk [vmem:[%s1294_s9 + $0x40] sm:$0xff] %vm790_vm1, %v767_v16 }
 0x20a   : > { %v769_v17 = vpop.f32.mrf.mxu0 }
 0x20b   : > { %v770_v18 = vadd.f32 %v927_v62, %v769_v17 }
 0x20d   : > { %800 = vst.msk [vmem:[%s1294_s9 + $0x48] sm:$0xff] %vm790_vm1, %v770_v18 }
 0x212   : > { %v772_v19 = vpop.f32.mrf.mxu0 }
 0x213   : > { %v773_v20 = vadd.f32 %v927_v62, %v772_v19 }
 0x215   : > { %801 = vst.msk [vmem:[%s1294_s9 + $0x50] sm:$0xff] %vm790_vm1, %v773_v20 }
 0x21a   : > { %v775_v21 = vpop.f32.mrf.mxu0 }
 0x21b   : > { %v776_v22 = vadd.f32 %v927_v62, %v775_v21 }
 0x21d   : > { %802 = vst.msk [vmem:[%s1294_s9 + $0x58] sm:$0xff] %vm790_vm1, %v776_v22 }
 0x222   : > { %v778_v23 = vpop.f32.mrf.mxu0 }
 0x223   : > { %v779_v24 = vadd.f32 %v927_v62, %v778_v23 }
 0x225   : > { %803 = vst.msk [vmem:[%s1294_s9 + $0x60] sm:$0xff] %vm790_vm1, %v779_v24 }
 0x22a   : > { %v781_v49 = vpop.f32.mrf.mxu0 }
 0x22b   : > { %v782_v25 = vadd.f32 %v927_v62, %v781_v49 }
 0x22d   : > { %804 = vst.msk [vmem:[%s1294_s9 + $0x68] sm:$0xff] %vm790_vm1, %v782_v25 }
 0x232   : > { %v784_v26 = vpop.f32.mrf.mxu0 }
 0x233   : > { %v785_v27 = vadd.f32 %v927_v62, %v784_v26 }
 0x235   : > { %805 = vst.msk [vmem:[%s1294_s9 + $0x70] sm:$0xff] %vm790_vm1, %v785_v27 }
 0x23a   : > { %v787_v28 = vpop.f32.mrf.mxu0 }
 0x23b   : > { %v788_v29 = vadd.f32 %v927_v62, %v787_v28 }
 0x23d   : > { %806 = vst.msk [vmem:[%s1294_s9 + $0x78] sm:$0xff] %vm790_vm1, %v788_v29 }
 0x23e PF: > { %s17_s24 = sadd.s32 1, %s934_s24  }
 0x23f   : > { %p14_p4 = scmp.ge.s32.totalorder %s17_s24, 4  }
 0x241   :  { %16 = sbr.rel (!%p14_p4) target bundleno = 1 (0x1), region = 78 }

</bundles_post_ra>
